<compile_context>
chip_gen: v7x
topology: tpu7x:2x2x1
jax: 0.10.0
libtpu: 0.0.40
codegen_flags: <defaults>
</compile_context>

<pallas_src>
import functools

import jax
import jax.numpy as jnp
import numpy as np
from jax.experimental import pallas as pl
from jax.experimental.pallas import tpu as pltpu


def _tcn_conv_kernel(x_ref, w_ref, b_ref, o_ref, *, k_taps, dilation, tl, time_tiled):
    # x_ref: (1, C_in, Lp + halo) bf16 -- whole padded row, resident across time tiles
    # w_ref: (K, C_out, C_in)     bf16 -- conv taps (contraction dim = C_in)
    # b_ref: (C_out, 1)           f32
    # o_ref: (1, C_out, TL)       bf16 -- lane-dense output tile
    if time_tiled:
        t0 = pl.multiple_of(pl.program_id(1) * tl, 128)

    acc = jnp.zeros(o_ref.shape[1:], jnp.float32)
    for k in range(k_taps):  # K is small & static -> unrolled, one MXU matmul per tap
        off = k * dilation
        if time_tiled:
            xk = x_ref[0, :, pl.ds(t0 + off, tl)]
        else:
            xk = x_ref[0, :, off:off + tl]
        acc = acc + jnp.dot(w_ref[k], xk, preferred_element_type=jnp.float32)
    acc = acc + b_ref[...]

    # relu1 -> dropout (inference identity) -> final relu (idempotent after relu1)
    o_ref[0] = jnp.maximum(acc, 0.0).astype(o_ref.dtype)


_VMEM_BUDGET_BYTES = 40 * 1024 * 1024  # conservative: fits v7x's 64 MiB physical VMEM


def _pick_time_tile(lp, c_in, c_out, k, dilation):
    """Largest lane-dense (multiple of 128) output time tile within the VMEM budget."""
    halo = (k - 1) * dilation
    resident = 2 * c_in * (lp + halo) * 2      # double-buffered bf16 input row
    resident += 2 * k * c_out * c_in * 2       # bf16 weights
    resident += 2 * c_out * 1 * 4              # f32 bias
    tl = lp
    while tl > 128 and (lp % tl != 0
                        or resident + 2 * c_out * tl * 2 > _VMEM_BUDGET_BYTES):
        tl -= 128
    # TODO(synk): if the resident row alone exceeds the budget (very long sequences
    # at wide channels), a halo-blocked input BlockSpec would be needed.
    return tl, resident + 2 * c_out * tl * 2


def temporal_block_forward(x, weight, bias, *, kernel_size, stride, dilation, padding,
                           out_dtype=jnp.bfloat16):
    """x: (N, C_in, L). weight: (C_out, C_in, K). bias: (C_out,).

    Reproduces TemporalBlock.forward (stride=1): weight-normed conv1d(padding,
    dilation) -> chomp(padding) -> relu -> dropout(eval) -> relu.
    """
    assert stride == 1, "TemporalBlock kernel implemented for stride=1 (TCN setting)"
    N, C_in, L = x.shape
    C_out, _, K = weight.shape
    assert K == kernel_size
    halo = (K - 1) * dilation
    L_out = L + padding - halo                  # conv output length after the chomp
    assert L_out > 0

    # Lane-dense output length (multiple of 128); slice back to L_out at the end.
    Lp = ((L_out + 127) // 128) * 128

    # Causal input row: left-pad by `padding` (the chomp is implicit -- the PyTorch
    # right zero-pad is never read by the kept outputs); right-pad so output
    # position Lp-1 can read its last tap.  Total length = Lp + halo.
    x_row = jnp.pad(x, ((0, 0), (0, 0), (padding, Lp - L_out))).astype(jnp.bfloat16)

    # Taps as a leading dim (K, C_out, C_in); contraction stays over C_in.
    w_taps = jnp.transpose(weight, (2, 0, 1)).astype(jnp.bfloat16)
    b2d = bias.reshape(C_out, 1).astype(jnp.float32)

    TL, footprint = _pick_time_tile(Lp, C_in, C_out, K, dilation)
    num_t = Lp // TL
    time_tiled = num_t > 1

    kernel = functools.partial(_tcn_conv_kernel, k_taps=K, dilation=dilation,
                               tl=TL, time_tiled=time_tiled)

    if time_tiled:
        grid = (N, num_t)
        x_map = lambda n, t: (n, 0, 0)          # input row resident across time tiles
        w_map = lambda n, t: (0, 0, 0)
        b_map = lambda n, t: (0, 0)
        o_map = lambda n, t: (n, 0, t)
        semantics = ("parallel", "parallel")
    else:
        grid = (N,)
        x_map = lambda n: (n, 0, 0)
        w_map = lambda n: (0, 0, 0)
        b_map = lambda n: (0, 0)
        o_map = lambda n: (n, 0, 0)
        semantics = ("parallel",)

    # Only raise the scoped VMEM limit when the tiles actually need it
    # (defaults: ~16 MiB on v5e, ~32 MiB on v6e/v7x; v7x physical is 64 MiB).
    vmem_limit = 48 * 1024 * 1024 if footprint > 8 * 1024 * 1024 else None

    out = pl.pallas_call(
        kernel,
        out_shape=jax.ShapeDtypeStruct((N, C_out, Lp), out_dtype),
        grid_spec=pltpu.PrefetchScalarGridSpec(
            num_scalar_prefetch=0,
            grid=grid,
            in_specs=[
                pl.BlockSpec((1, C_in, Lp + halo), x_map),
                pl.BlockSpec((K, C_out, C_in), w_map),
                pl.BlockSpec((C_out, 1), b_map),
            ],
            out_specs=pl.BlockSpec((1, C_out, TL), o_map),
        ),
        compiler_params=pltpu.CompilerParams(
            dimension_semantics=semantics,
            vmem_limit_bytes=vmem_limit,
        ),
    )(x_row, w_taps, b2d)

    return out[:, :, :L_out]


def make_params(key, n_inputs, n_outputs, kernel_size):
    """Deterministic parameters mimicking weight_norm(nn.Conv1d) init."""
    kv, kg, kb = jax.random.split(key, 3)
    v = 0.01 * jax.random.normal(kv, (n_outputs, n_inputs, kernel_size), jnp.float32)
    g = 1.0 + 0.1 * jax.random.normal(kg, (n_outputs, 1, 1), jnp.float32)
    v_norm = jnp.sqrt(jnp.sum(v * v, axis=(1, 2), keepdims=True)) + 1e-12
    weight = g * v / v_norm                     # effective weight-normed weight
    bound = 1.0 / np.sqrt(n_inputs * kernel_size)
    bias = jax.random.uniform(kb, (n_outputs,), jnp.float32, -bound, bound)
    return weight, bias


def reference_forward(x, weight, bias, *, dilation, padding):
    """Pure-JAX reference: conv1d(pad both sides) -> chomp -> relu -> relu."""
    y = jax.lax.conv_general_dilated(
        x, weight,
        window_strides=(1,),
        padding=[(padding, padding)],
        rhs_dilation=(dilation,),
        dimension_numbers=("NCH", "OIH", "NCH"),
        precision=jax.lax.Precision.HIGHEST,
    )
    y = y + bias[None, :, None]
    y = y[:, :, : y.shape[2] - padding]         # Chomp1d(padding)
    return jnp.maximum(jnp.maximum(y, 0.0), 0.0)


if __name__ == "__main__":
    # Shapes consistent with the module: batch=2, n_inputs=4, n_outputs=8,
    # seq_len=128, kernel_size=3, dilation=2, padding=(k-1)*dilation=4, stride=1.
    N, C_in, C_out, L = 2, 4, 8, 128
    kernel_size, stride, dilation = 3, 1, 2
    padding = (kernel_size - 1) * dilation

    key = jax.random.PRNGKey(0)
    kx, kp = jax.random.split(key)
    x = jax.random.normal(kx, (N, C_in, L), jnp.float32)
    weight, bias = make_params(kp, C_in, C_out, kernel_size)

    out = temporal_block_forward(
        x, weight, bias,
        kernel_size=kernel_size, stride=stride, dilation=dilation, padding=padding,
    )
    out = jax.block_until_ready(out)

    # Reference on bf16-rounded operands (the kernel feeds bf16 to the MXU with f32
    # accumulation and stores bf16), so the tolerance only covers bf16 rounding of
    # the output plus accumulation-order differences.
    x_r = x.astype(jnp.bfloat16).astype(jnp.float32)
    w_r = weight.astype(jnp.bfloat16).astype(jnp.float32)
    ref = reference_forward(x_r, w_r, bias, dilation=dilation, padding=padding)
    np.testing.assert_allclose(
        np.asarray(out.astype(jnp.float32)), np.asarray(ref), rtol=2e-2, atol=2e-2
    )

    print("KERNEL_OK")
</pallas_src>

<mosaic_0001>
module attributes {stable_mosaic.version = 11 : i64} {
  func.func @_tcn_conv_kernel(%arg0: i32, %arg1: memref<1x4x132xbf16, #tpu.memory_space<vmem>>, %arg2: memref<3x8x4xbf16, #tpu.memory_space<vmem>>, %arg3: memref<8x1xf32, #tpu.memory_space<vmem>>, %arg4: memref<1x8x128xbf16, #tpu.memory_space<vmem>>) attributes {dimension_semantics = [#tpu.dimension_semantics<parallel>], iteration_bounds = array<i64: 2>, scalar_prefetch = 0 : i64, scratch_operands = 0 : i64, tpu.core_type = #tpu.core_type<tc>, window_params = [{transform_indices = @transform_0, window_bounds = array<i64: 1, 4, 132>}, {pipeline_mode = #tpu.pipeline_mode<synchronous>, transform_indices = @transform_1, window_bounds = array<i64: 3, 8, 4>}, {pipeline_mode = #tpu.pipeline_mode<synchronous>, transform_indices = @transform_2, window_bounds = array<i64: 8, 1>}, {transform_indices = @transform_3, window_bounds = array<i64: 1, 8, 128>}]} {
    %cst = arith.constant 0.000000e+00 : f32
    %0 = vector.broadcast %cst : f32 to vector<8x128xf32>
    %c0 = arith.constant 0 : index
    %c0_0 = arith.constant 0 : index
    %c0_1 = arith.constant 0 : index
    %1 = vector.load %arg1[%c0, %c0_0, %c0_1] : memref<1x4x132xbf16, #tpu.memory_space<vmem>>, vector<1x4x128xbf16>
    %2 = vector.shape_cast %1 : vector<1x4x128xbf16> to vector<4x128xbf16>
    %c0_2 = arith.constant 0 : index
    %c0_3 = arith.constant 0 : index
    %c0_4 = arith.constant 0 : index
    %3 = vector.load %arg2[%c0_2, %c0_3, %c0_4] : memref<3x8x4xbf16, #tpu.memory_space<vmem>>, vector<1x8x4xbf16>
    %4 = vector.shape_cast %3 : vector<1x8x4xbf16> to vector<8x4xbf16>
    %cst_5 = arith.constant dense<0.000000e+00> : vector<8x128xf32>
    %5 = tpu.matmul %4, %2, %cst_5 {dimension_numbers = #tpu.dot_dimension_numbers<[1], [0], [0], [1], [0, 0, 1, 1], [], []>} : vector<8x4xbf16>, vector<4x128xbf16>, vector<8x128xf32> -> vector<8x128xf32>
    %6 = arith.addf %0, %5 : vector<8x128xf32>
    %c0_6 = arith.constant 0 : index
    %c0_7 = arith.constant 0 : index
    %c2 = arith.constant 2 : index
    %7 = vector.load %arg1[%c0_6, %c0_7, %c2] : memref<1x4x132xbf16, #tpu.memory_space<vmem>>, vector<1x4x128xbf16>
    %8 = vector.shape_cast %7 : vector<1x4x128xbf16> to vector<4x128xbf16>
    %c1 = arith.constant 1 : index
    %c0_8 = arith.constant 0 : index
    %c0_9 = arith.constant 0 : index
    %9 = vector.load %arg2[%c1, %c0_8, %c0_9] : memref<3x8x4xbf16, #tpu.memory_space<vmem>>, vector<1x8x4xbf16>
    %10 = vector.shape_cast %9 : vector<1x8x4xbf16> to vector<8x4xbf16>
    %cst_10 = arith.constant dense<0.000000e+00> : vector<8x128xf32>
    %11 = tpu.matmul %10, %8, %cst_10 {dimension_numbers = #tpu.dot_dimension_numbers<[1], [0], [0], [1], [0, 0, 1, 1], [], []>} : vector<8x4xbf16>, vector<4x128xbf16>, vector<8x128xf32> -> vector<8x128xf32>
    %12 = arith.addf %6, %11 : vector<8x128xf32>
    %c0_11 = arith.constant 0 : index
    %c0_12 = arith.constant 0 : index
    %c4 = arith.constant 4 : index
    %13 = vector.load %arg1[%c0_11, %c0_12, %c4] : memref<1x4x132xbf16, #tpu.memory_space<vmem>>, vector<1x4x128xbf16>
    %14 = vector.shape_cast %13 : vector<1x4x128xbf16> to vector<4x128xbf16>
    %c2_13 = arith.constant 2 : index
    %c0_14 = arith.constant 0 : index
    %c0_15 = arith.constant 0 : index
    %15 = vector.load %arg2[%c2_13, %c0_14, %c0_15] : memref<3x8x4xbf16, #tpu.memory_space<vmem>>, vector<1x8x4xbf16>
    %16 = vector.shape_cast %15 : vector<1x8x4xbf16> to vector<8x4xbf16>
    %cst_16 = arith.constant dense<0.000000e+00> : vector<8x128xf32>
    %17 = tpu.matmul %16, %14, %cst_16 {dimension_numbers = #tpu.dot_dimension_numbers<[1], [0], [0], [1], [0, 0, 1, 1], [], []>} : vector<8x4xbf16>, vector<4x128xbf16>, vector<8x128xf32> -> vector<8x128xf32>
    %18 = arith.addf %12, %17 : vector<8x128xf32>
    %c0_17 = arith.constant 0 : index
    %c0_18 = arith.constant 0 : index
    %19 = vector.load %arg3[%c0_17, %c0_18] : memref<8x1xf32, #tpu.memory_space<vmem>>, vector<8x1xf32>
    %20 = vector.broadcast %19 : vector<8x1xf32> to vector<8x128xf32>
    %21 = arith.addf %18, %20 : vector<8x128xf32>
    %cst_19 = arith.constant 0.000000e+00 : f32
    %22 = vector.broadcast %cst_19 : f32 to vector<8x128xf32>
    %23 = arith.maximumf %21, %22 : vector<8x128xf32>
    %24 = arith.truncf %23 : vector<8x128xf32> to vector<8x128xbf16>
    %c0_20 = arith.constant 0 : index
    %c0_21 = arith.constant 0 : index
    %c0_22 = arith.constant 0 : index
    %25 = vector.load %arg4[%c0_20, %c0_21, %c0_22] : memref<1x8x128xbf16, #tpu.memory_space<vmem>>, vector<1x8x128xbf16>
    %26 = vector.shape_cast %25 : vector<1x8x128xbf16> to vector<8x128xbf16>
    %27 = vector.shape_cast %24 : vector<8x128xbf16> to vector<1x8x128xbf16>
    tpu.vector_store %arg4[%c0_20, %c0_21, %c0_22], %27 {strides = array<i32>} : memref<1x8x128xbf16, #tpu.memory_space<vmem>>, vector<1x8x128xbf16>,
    return
  }
  func.func @transform_0(%arg0: i32) -> (i32, i32, i32) {
    %c0_i32 = arith.constant 0 : i32
    %c0_i32_0 = arith.constant 0 : i32
    %c0_i32_1 = arith.constant 0 : i32
    return %arg0, %c0_i32, %c0_i32_0 : i32, i32, i32
  }
  func.func @transform_1(%arg0: i32) -> (i32, i32, i32) {
    %c0_i32 = arith.constant 0 : i32
    %c0_i32_0 = arith.constant 0 : i32
    %c0_i32_1 = arith.constant 0 : i32
    %c0_i32_2 = arith.constant 0 : i32
    return %c0_i32, %c0_i32_0, %c0_i32_1 : i32, i32, i32
  }
  func.func @transform_2(%arg0: i32) -> (i32, i32) {
    %c0_i32 = arith.constant 0 : i32
    %c0_i32_0 = arith.constant 0 : i32
    %c0_i32_1 = arith.constant 0 : i32
    return %c0_i32, %c0_i32_0 : i32, i32
  }
  func.func @transform_3(%arg0: i32) -> (i32, i32, i32) {
    %c0_i32 = arith.constant 0 : i32
    %c0_i32_0 = arith.constant 0 : i32
    %c0_i32_1 = arith.constant 0 : i32
    return %arg0, %c0_i32, %c0_i32_0 : i32, i32, i32
  }
}

</mosaic_0001>

<bundles_post_ra>
// kernel: tpu_custom_call.1
= control target key start
LH: loop header
LB: loop body
LE: loop exit
PB: predicated region body
PF: predicated region fallthrough
CT: control target
= control target key end

     0   :  { %8 = vsyncpa [#allocation3], 0  ;;  %s731_s0 = inlined_call_operand.vmem [shape: bf16[2,4,132], index: 0, kind: input, shape index: {}]   ;;  %s732_s1 = inlined_call_operand.vmem [shape: bf16[3,8,4], index: 1, kind: input, shape index: {}]   ;;  %s733_s2 = inlined_call_operand.vmem [shape: f32[8,1], index: 2, kind: input, shape index: {}]   ;;  %s734_s3 = inlined_call_operand.hbm [shape: bf16[2,8,128], index: 3, kind: output, shape index: {}]  }
   0x1   :  { %10 = vsyncpa [#allocation3 + $0x1], 0  ;;  %s610_s12 = smov 0   ;;  %s612_s13 = smov 0  }
   0x2   :  { %s614_s14 = smov 0   ;;  %s616_s15 = smov 0  }
   0x3 LB: > { %s631_s16 = sadd.s32 4294967295, %s582_s15   ;;  %s432_s17 = sadd.s32 4294967294, %s582_s15   ;;  %s582_s15 = sphi %s616_s15, %s740_s15   ;;  %s578_s14 = sphi %s614_s14, %s739_s14   ;;  %s574_s13 = sphi %s612_s13, %s738_s13   ;;  %s570_s12 = sphi %s610_s12, %s737_s12  }
   0x4   : > { %s635_s18 = sadd.s32 1, %s582_s15   ;;  %s91_s19 = sadd.s32 1, %s578_s14 }
   0x5   : > { %s88_s20 = ssub.s32 %s582_s15, %s635_s18  ;;  %p101_p0 = scmp.ne.s32.totalorder %s578_s14, %s574_s13 }
   0x6   : > { %p89_p1 = scmp.eq.s32.totalorder %s88_s20, 0  ;;  %p102_p2 = scmp.eq.s32.totalorder %s631_s16, 1 }
   0x7   : > { %p107_p3 = scmp.ne.s32.totalorder %s574_s13, %s570_s12  ;;  %p108_p4 = scmp.eq.s32.totalorder %s432_s17, 1 }
   0x8   : > { %s646_s21 = scalar_select %p89_p1, %s578_s14, %s91_s19  }
   0x9   : > { %p648_p5 = por %p102_p2, %p101_p0  ;;  %p652_p6 = por %p108_p4, %p107_p3 }
   0xa   : > { %p435_p7 = scmp.ge.s32.totalorder %s582_s15, 1  ;;  %p140_p8 = scmp.lt.s32.totalorder %s582_s15, 3 }
   0xc   : > { %p141_p9 = pnand %p435_p7, %p140_p8 }
   0xd   : > { %p164_p10 = scmp.lt.s32.totalorder (!%p141_p9), %s631_s16, 1  ;;  %v584_v0 = vmov (!%p141_p9), 0.0   ;;  %vm585_vm0 = vmmov (!%p141_p9), 0   ;;  %vm194_vm1 = vcmask (!%p141_p9), 1041408   ;;  %s586_s29 = smov (!%p141_p9), 124   ;;  %vm190_vm2 = vcmask (!%p141_p9), 31744  }
   0xe   : > { %144 = sbr.rel (%p141_p9) target bundleno = 392 (0x188), region = 32  ;;  %457 = vmatprep.subr.bf16.mxu0 (!%p141_p9), %v584_v0  ;;  %463 = vmatprep.subr.bf16.mxu1 (!%p141_p9), %v584_v0  ;;  %s587_s30 = smov (!%p141_p9), 126   ;;  %v171_v5 = vld [vmem:[%s732_s1] sm:$0xf] (!%p141_p9)  ;;  %v588_v6 = vmov (!%p141_p9), 0   ;;  %vm300_vm3 = vcmask (!%p141_p9), 1014784  }
   0xf   : > { %459 = vmatprep.mubr.msk.bf16.mxu0 (!%p141_p9), %vm585_vm0, %v584_v0  ;;  %465 = vmatprep.mubr.msk.bf16.mxu1 (!%p141_p9), %vm585_vm0, %v584_v0  ;;  %v349_v7 = vld [vmem:[%s733_s2] sm:$0xff] (!%p141_p9)  ;;  %vm188_vm4 = vcmask (!%p141_p9), 1031168   ;;  %v443_v17 = vld [vmem:[%s732_s1 + $0x8] sm:$0xf] (!%p141_p9)  ;;  %s161_s17 = sand.u32 (!%p141_p9), 1, %s574_s13   ;;  %s447_s20 = sshll.u32 (!%p141_p9), %s631_s16, 6 }
  0x10   : > { %519 = vset.pattern.permute.xlu0 (!%p141_p9), %v588_v6  ;;  %v439_v15 = vld [vmem:[%s732_s1 + $0x4] sm:$0xf] (!%p141_p9)  ;;  %s436_s19 = sshll.u32 (!%p141_p9), %s161_s17, 2 }
  0x15   : > { %s165_s24 = scalar_select %p164_p10, %s631_s16, 1 }
  0x16   : > { %s589_s16 = smov [#allocation2]  }
  0x17   : > { %s450_s25 = sshll.u32 %s165_s24, 2  ;;  %s163_s24 = scalar_lea.vmem [#allocation2], %s436_s19 }
  0x18   : > { %s168_s28 = scalar_lea.vmem %s731_s0, %s450_s25  ;;  %s373_s25 = sshll.u32 %s163_s24, 4  ;;  %s691_s25 = int_to_ptr.vmem [resolvable:$true] %s373_s25 }
  0x19   : > { %v444_v1 = vld.sshfl [vmem:[%s168_s28] sm:$0x33 pattern:$0x76325410]  ;;  %s524_s4 = sshll.u32 %s589_s16, 4  ;;  %s525_s4 = int_to_ptr.vmem [resolvable:$false] %s524_s4 }
  0x1a   : > { %v170_v2 = vld [vmem:[%s168_s28] sm:$0x3]  ;;  %296 = vrot.lane.b32.xlu1 %v444_v1, %s586_s29  ;;  %v295_v3 = vcombine.high %v444_v1, %v444_v1  ;;  %184 = vrot.lane.b32.xlu0 %v444_v1, %s587_s30  ;;  %s689_s28 = scalar_lea.hbm %s734_s3, %s447_s20  ;;  %s526_s5 = scalar_lea.vmem %s525_s4, 128 }
  0x1b   : > { %v242_v4 = vsel %vm194_vm1, %v170_v2, 0  ;;  %p527_p0 = scmp.lt.s32.totalorder %s691_s25, %s525_s4 }
  0x1c   : > { %464 = vmatpush3.bf16.msra.mxu1 %v242_v4 }
  0x1e   : > { %298 = vrot.lane.b32.xlu1 %v295_v3, %s586_s29  ;;  %186 = vrot.lane.b32.xlu0 %v295_v3, %s587_s30  ;;  %s360_s29 = scalar_lea.sflag [#allocation3], %s161_s17  ;;  %s520_s30 = scalar_lea.vmem %s691_s25, 64 }
  0x1f   : > { %466 = vmatmul.mubr.msk.bf16.vlgmr.msra.gmra.mrb[0].mxu1 %vm190_vm2, %v171_v5  ;;  %p521_p11 = scmp.ne.s32.totalorder %s691_s25, %s520_s30  ;;  %p528_p1 = scmp.lt.s32.totalorder %s526_s5, %s520_s30 }
  0x21   : > { %p522_p12 = pnand %p521_p11, %p648_p5  ;;  %p529_p2 = por %p528_p1, %p527_p0 }
  0x22   : > { %352 = vperm.xlu0 %519, %v349_v7  }
  0x23   : > { %p523_p13 = pneg %p522_p12 }
  0x25   : > { %p530_p3 = pnand %p529_p2, %p523_p13 }
  0x8c   : > { %v297_v8 = vpop.permute.xlu1 %296  ;;  %v185_v9 = vpop.permute.xlu0 %184 }
  0x90   : > { %v299_v10 = vpop.permute.xlu1 %298  ;;  %v187_v11 = vpop.permute.xlu0 %186 }
  0x91   : > { %v301_v12 = vsel %vm300_vm3, %v297_v8, %v299_v10  ;;  %v189_v13 = vsel %vm188_vm4, %v185_v9, %v187_v11 }
  0x92   : > { %v196_v14 = vsel %vm194_vm1, %v189_v13, 0  ;;  %v306_v16 = vsel %vm194_vm1, %v301_v12, 0 }
  0x93   : > { %458 = vmatpush3.bf16.msra.mxu0 %v196_v14 }
  0x94   : > { %469 = vmatprep.subr.bf16.mxu0 %v584_v0 }
  0x96   : > { %460 = vmatmul.mubr.msk.bf16.vlgmr.msra.gmra.mrb[0].mxu0 %vm190_vm2, %v439_v15 }
  0x97   : > { %470 = vmatpush3.bf16.msra.mxu0 %v306_v16  ;;  %471 = vmatprep.mubr.msk.bf16.mxu0 %vm585_vm0, %v584_v0 }
  0x9e   : > { %472 = vmatmul.mubr.msk.bf16.vlgmr.msra.gmra.mrb[4].mxu0 %vm190_vm2, %v443_v17 }
  0xa1   : > { %v353_v28 = vpop.permute.xlu0 %352 }
  0xf2   : > { %v278_v18 = vpop.f32.mrb[0].mxu1 }
  0xf3   : > { %v467_v19 = vpop.f32.mrb[1].mxu1 }
  0xf4   : > { %v281_v20 = vpop.f32.mrb[2].mxu1 }
  0xf5   : > { %v468_v21 = vpop.f32.mrb[3].mxu1 }
 0x169   : > { %v232_v22 = vpop.f32.mrb[0].mxu0 }
 0x16a   : > { %v461_v23 = vpop.f32.mrb[1].mxu0  ;;  %v279_v24 = vadd.f32 %v278_v18, %v232_v22 }
 0x16b   : > { %v235_v25 = vpop.f32.mrb[2].mxu0 }
 0x16c   : > { %v462_v26 = vpop.f32.mrb[3].mxu0 }
 0x171   : > { %v342_v27 = vpop.f32.mrb[4].mxu0 }
 0x172   : > { %v348_v29 = vadd.f32 %v342_v27, %v279_v24  ;;  %v473_v30 = vpop.f32.mrb[5].mxu0 }
 0x173   : > { %v345_v31 = vpop.f32.mrb[6].mxu0 }
 0x174   : > { %v355_v32 = vadd.f32 %v353_v28, %v348_v29  ;;  %v474_v33 = vpop.f32.mrb[7].mxu0 }
 0x176   : > { %v356_v34 = vmax.f32 %v355_v32, 0.0 }
 0x178   : > { %v357_v35 = vpack.c.bf16 %v356_v34, %v356_v34 }
 0x17a   : > { %358 = vst [vmem:[%s163_s24] sm:$0xf] %v357_v35 }
 0x17b   : > { %533 = shalt.err (!%p530_p3)
}
 0x17c   : > { %s534_s6 = scalar_lea.hbm %s689_s28, 64  ;;  %s538_s9 = scalar_lea.hbm %s734_s3, 128 }
 0x17d   : > { %p535_p4 = scmp.ne.s32.totalorder %s689_s28, %s534_s6  ;;  %p539_p9 = scmp.lt.u32.totalorder %s689_s28, %s734_s3 }
 0x17e   : > { %p540_p10 = scmp.lt.u32.totalorder %s538_s9, %s534_s6  ;;  %p542_p12 = scmp.lt.u32.totalorder %s534_s6, %s689_s28 }
 0x17f   : > { %p536_p7 = pnand %p535_p4, %p648_p5 }
 0x180   : > { %p541_p11 = por %p540_p10, %p539_p9 }
 0x181   : > { %p537_p8 = pneg %p536_p7 }
 0x182   : > { %p543_p13 = por %p542_p12, %p541_p11 }
 0x184   : > { %p544_p0 = pnand %p543_p13, %p537_p8 }
 0x186   : > { %547 = shalt.err (!%p544_p0)
}
 0x187   : > { %475 = dma.vmem_to_hbm [thread:$0]  (%p648_p5), %s691_s25, 64, %s689_s28, %s360_s29  }
 0x188 PF: > { %p481_p1 = scmp.ge.s32.totalorder %s582_s15, 2  ;;  %s385_s17 = sand.u32 1, %s570_s12  }
 0x189   : > { %s386_s19 = scalar_lea.sflag [#allocation3], %s385_s17 }
 0x18a   : > { %p478_p2 = pnand %p481_p1, %p652_p6 }
 0x18c   : > { %565 = dma.done.wait (!%p478_p2), %s386_s19, 64  }
 0x18d   : > { %567 = vsyncadd (!%p478_p2), %s386_s19, 4294967232  ;;  %p13_p3 = scmp.ge.s32.totalorder %s635_s18, 4   ;;  %s737_s12 = smov %s574_s13 }
 0x18e   : > { %s738_s13 = smov %s578_s14  ;;  %s739_s14 = smov %s646_s21 }
 0x18f   : > { %s740_s15 = smov %s635_s18  ;;  %15 = sbr.rel (!%p13_p3) target bundleno = 3 (0x3), region = 69 }
 0x196   :  { %391 = vsyncpa [#allocation3], 1 }
 0x197   :  { %393 = vsyncpa [#allocation3 + $0x1], 1 }

</bundles_post_ra>
